<compile_context>
chip_gen: v6e
topology: v6e:2x2x1
jax: 0.10.0
libtpu: 0.0.40
codegen_flags: <defaults>
</compile_context>

<pallas_src>
import jax
import jax.numpy as jnp
from jax.experimental import pallas as pl
from jax.experimental.pallas import tpu as pltpu


def _round_up(x, m):
    return (x + m - 1) // m * m


def _pe_kernel(thr_ref, pe_ref, out_ref):
    """One grid step: one lane-dense chunk of the flattened output.

    thr_ref : VMEM int32[B, 1]   per-batch flat threshold = length * d_model
    pe_ref  : VMEM  T[1, W]      flat sinusoidal table chunk (offset pos*D + j)
    out_ref : VMEM  T[B, W]
    """
    w = out_ref.shape[-1]
    c = pl.program_id(0)
    # Remaining in-range flat elements for this chunk, per batch row.
    rem = thr_ref[...] - c * w                                 # (B, 1) int32
    lane = jax.lax.broadcasted_iota(jnp.int32, (1, w), 1)      # (1, W) int32
    mask = lane < rem                                          # (B, W) bool (broadcast)
    # Broadcast the table row across the batch; zero past each batch's length.
    out_ref[...] = jnp.where(mask, pe_ref[...], 0.0)


def make_pe_table(d_model, max_seq_len, dtype=jnp.float32):
    """Sinusoidal table: row t == PE(pos=t), shape (max_seq_len, d_model).

    Matches rows 1..max_seq_len of the PyTorch embedding weight (row 0 there is
    the pad row, which the kernel's length mask reproduces as zeros).
    """
    pos = jnp.arange(max_seq_len, dtype=jnp.float32)[:, None]        # (S, 1)
    j = jnp.arange(d_model, dtype=jnp.float32)[None, :]              # (1, D)
    angle = pos / jnp.power(10000.0, 2.0 * jnp.floor(j / 2.0) / d_model)
    pe = jnp.where((jnp.arange(d_model) % 2 == 0)[None, :],
                   jnp.sin(angle), jnp.cos(angle))
    return pe.astype(dtype)                                          # (S, D)


def positional_encoding_forward(input_len, pe_table, *, max_len=None,
                                target_tile_bytes=4 << 20):
    """input_len: int array [B, 1] (or [B]). Returns pe_table.dtype[B, max_len, d_model].

    `max_len` may be supplied statically (recommended under jit / to avoid the
    host sync and per-shape recompiles); otherwise it is read from the device.
    """
    lengths = jnp.asarray(input_len).reshape(-1).astype(jnp.int32)
    batch = int(lengths.shape[0])
    seq_len, d_model = pe_table.shape
    dtype = pe_table.dtype
    itemsize = jnp.dtype(dtype).itemsize

    if max_len is None:
        # TODO(synk): host sync + fresh static shape per distinct max_len;
        # pass `max_len` statically (or bucketed) when calling under jax.jit.
        max_len = int(jax.device_get(jnp.max(lengths)))
    max_len = int(max_len)
    if batch == 0 or max_len <= 0:
        return jnp.zeros((batch, max(max_len, 0), d_model), dtype)
    if max_len > seq_len:
        # PyTorch would raise an embedding index error; fail loudly instead of
        # silently emitting zeros.
        raise ValueError(f"max(input_len)={max_len} exceeds table rows {seq_len}")

    # Flat view: out[b] is the row-major stream of max_len*d_model elements,
    # identical in layout to the table's own row-major stream.
    flat = max_len * d_model                                   # exact per-batch width
    pe_flat = pe_table.reshape(1, seq_len * d_model)           # free contiguous reshape
    thr = (lengths * d_model).reshape(batch, 1)                # per-batch threshold

    if flat < 128:
        # Tiny case: single full-array block (lane padding impossible).
        chunk = flat
        pe_flat = pe_flat[:, :flat]
    else:
        # Lane-dense chunking: multiple of 128 lanes -> unmasked stores; the
        # trailing partial block is clipped by Pallas (no post-kernel trim).
        chunk = max(target_tile_bytes // (batch * itemsize), 128)
        # Keep 2x double-buffered (in + out) blocks well under the 32 MiB
        # scoped-VMEM limit set below (safe on v5e/v6e/v7x).
        chunk = min(chunk, (24 << 20) // (2 * (batch + 1) * itemsize))
        # >= 2 grid steps so both v7x TensorCores get work on the parallel axis.
        chunk = min(chunk, _round_up(pl.cdiv(flat, 2), 128))
        chunk = max(chunk // 128 * 128, 128)

    num_chunks = pl.cdiv(flat, chunk)

    grid_spec = pl.GridSpec(
        grid=(num_chunks,),
        in_specs=[
            pl.BlockSpec((batch, 1), lambda c: (0, 0)),        # thresholds (resident)
            pl.BlockSpec((1, chunk), lambda c: (0, c)),        # flat table chunk
        ],
        out_specs=pl.BlockSpec((batch, chunk), lambda c: (0, c)),
    )

    cost = pl.CostEstimate(
        flops=0,
        transcendentals=0,
        bytes_accessed=(batch * flat + flat) * itemsize + batch * 4,
    )

    out_flat = pl.pallas_call(
        _pe_kernel,
        out_shape=jax.ShapeDtypeStruct((batch, flat), dtype),
        grid_spec=grid_spec,
        compiler_params=pltpu.CompilerParams(
            dimension_semantics=("parallel",),
            vmem_limit_bytes=32 << 20),
        cost_estimate=cost,
    )(thr, pe_flat)

    # Free (row-major contiguous) reshape back to [B, max_len, d_model].
    return out_flat.reshape(batch, max_len, d_model)


def _reference(input_len, pe_table):
    """Pure-JAX reference mirroring the PyTorch embedding-gather exactly."""
    lengths = jnp.asarray(input_len).reshape(-1).astype(jnp.int32)
    max_len = int(jax.device_get(jnp.max(lengths)))
    d_model = pe_table.shape[1]
    emb = jnp.concatenate(
        [jnp.zeros((1, d_model), pe_table.dtype), pe_table], axis=0)
    t = jnp.arange(max_len, dtype=jnp.int32)[None, :]                # (1, L)
    idx = jnp.where(t < lengths[:, None], t + 1, 0)                  # (B, L)
    return emb[idx]                                                  # (B, L, D)


if __name__ == "__main__":
    d_model = 32
    max_seq_len = 16
    batch = 2

    key = jax.random.PRNGKey(0)
    # input_len: [BATCH_SIZE, 1], values in [1, max_seq_len]
    input_len = jax.random.randint(key, (batch, 1), 1, max_seq_len + 1,
                                   dtype=jnp.int32)

    pe_table = make_pe_table(d_model, max_seq_len)

    out = positional_encoding_forward(input_len, pe_table)
    out = jax.block_until_ready(out)

    ref = _reference(input_len, pe_table)
    assert out.shape == ref.shape, (out.shape, ref.shape)
    assert jnp.allclose(out, ref, atol=1e-6), "mismatch vs reference"

    print("KERNEL_OK")
</pallas_src>

<mosaic_0001>
module attributes {stable_mosaic.version = 11 : i64} {
  func.func @_pe_kernel(%arg0: i32, %arg1: memref<2x1xi32, #tpu.memory_space<vmem>>, %arg2: memref<1x128xf32, #tpu.memory_space<vmem>>, %arg3: memref<2x128xf32, #tpu.memory_space<vmem>>) attributes {dimension_semantics = [#tpu.dimension_semantics<parallel>], iteration_bounds = array<i64: 2>, scalar_prefetch = 0 : i64, scratch_operands = 0 : i64, tpu.core_type = #tpu.core_type<tc>, window_params = [{pipeline_mode = #tpu.pipeline_mode<synchronous>, transform_indices = @transform_0, window_bounds = array<i64: 2, 1>}, {transform_indices = @transform_1, window_bounds = array<i64: 1, 128>}, {transform_indices = @transform_2, window_bounds = array<i64: 2, 128>}]} {
    %c0 = arith.constant 0 : index
    %c0_0 = arith.constant 0 : index
    %0 = vector.load %arg1[%c0, %c0_0] : memref<2x1xi32, #tpu.memory_space<vmem>>, vector<2x1xi32>
    %c128_i32 = arith.constant 128 : i32
    %1 = arith.muli %arg0, %c128_i32 : i32
    %2 = vector.broadcast %1 : i32 to vector<2x1xi32>
    %3 = arith.subi %0, %2 : vector<2x1xi32>
    %4 = tpu.iota {dimensions = array<i32: 1>} : vector<1x128xi32>
    %5 = vector.broadcast %4 : vector<1x128xi32> to vector<2x128xi32>
    %6 = vector.broadcast %3 : vector<2x1xi32> to vector<2x128xi32>
    %7 = arith.cmpi slt, %5, %6 : vector<2x128xi32>
    %c0_1 = arith.constant 0 : index
    %c0_2 = arith.constant 0 : index
    %8 = vector.load %arg2[%c0_1, %c0_2] : memref<1x128xf32, #tpu.memory_space<vmem>>, vector<1x128xf32>
    %cst = arith.constant 0.000000e+00 : f32
    %9 = vector.shape_cast %8 : vector<1x128xf32> to vector<1x128xf32>
    %10 = vector.broadcast %9 : vector<1x128xf32> to vector<2x128xf32>
    %11 = vector.broadcast %cst : f32 to vector<2x128xf32>
    %12 = arith.select %7, %10, %11 : vector<2x128xi1>, vector<2x128xf32>
    %c0_3 = arith.constant 0 : index
    %c0_4 = arith.constant 0 : index
    %13 = vector.load %arg3[%c0_3, %c0_4] : memref<2x128xf32, #tpu.memory_space<vmem>>, vector<2x128xf32>
    tpu.vector_store %arg3[%c0_3, %c0_4], %12 {strides = array<i32>} : memref<2x128xf32, #tpu.memory_space<vmem>>, vector<2x128xf32>,
    return
  }
  func.func @transform_0(%arg0: i32) -> (i32, i32) {
    %c0_i32 = arith.constant 0 : i32
    %c0_i32_0 = arith.constant 0 : i32
    %c0_i32_1 = arith.constant 0 : i32
    return %c0_i32, %c0_i32_0 : i32, i32
  }
  func.func @transform_1(%arg0: i32) -> (i32, i32) {
    %c0_i32 = arith.constant 0 : i32
    %c0_i32_0 = arith.constant 0 : i32
    return %c0_i32, %arg0 : i32, i32
  }
  func.func @transform_2(%arg0: i32) -> (i32, i32) {
    %c0_i32 = arith.constant 0 : i32
    %c0_i32_0 = arith.constant 0 : i32
    return %c0_i32, %arg0 : i32, i32
  }
}

</mosaic_0001>

<bundles_post_ra>
// kernel: tpu_custom_call.1
= control target key start
LH: loop header
LB: loop body
LE: loop exit
PB: predicated region body
PF: predicated region fallthrough
CT: control target
= control target key end

     0   :  { %7 = vsyncpa [#allocation3], 0  ;;  %s453_s0 = inlined_call_operand.vmem [shape: s32[2,1], index: 0, kind: input, shape index: {}]   ;;  %s454_s1 = inlined_call_operand.vmem [shape: f32[1,512], index: 1, kind: input, shape index: {}]   ;;  %s455_s2 = inlined_call_operand.hbm [shape: f32[2,192], index: 2, kind: output, shape index: {}]  }
   0x1   :  { %9 = vsyncpa [#allocation3 + $0x1], 0  ;;  %s356_s9 = smov 0   ;;  %s358_s10 = smov 0  }
   0x2   :  { %s360_s11 = smov 0   ;;  %s362_s12 = smov 0  }
   0x3 LB: > { %s377_s13 = sadd.s32 4294967295, %s337_s12   ;;  %s225_s14 = sadd.s32 4294967294, %s337_s12   ;;  %s337_s12 = sphi %s362_s12, %s461_s12   ;;  %s333_s11 = sphi %s360_s11, %s460_s11   ;;  %s329_s10 = sphi %s358_s10, %s459_s10   ;;  %s325_s9 = sphi %s356_s9, %s458_s9  }
   0x4   : > { %s381_s15 = sadd.s32 1, %s337_s12   ;;  %s69_s16 = sadd.s32 1, %s333_s11 }
   0x5   : > { %s66_s17 = ssub.s32 %s337_s12, %s381_s15  ;;  %p79_p0 = scmp.ne.s32.totalorder %s333_s11, %s329_s10 }
   0x6   : > { %p67_p1 = scmp.eq.s32.totalorder %s66_s17, 0  ;;  %p80_p2 = scmp.eq.s32.totalorder %s377_s13, 1 }
   0x7   : > { %p85_p3 = scmp.ne.s32.totalorder %s329_s10, %s325_s9  ;;  %p86_p4 = scmp.eq.s32.totalorder %s225_s14, 1 }
   0x8   : > { %s392_s18 = scalar_select %p67_p1, %s333_s11, %s69_s16  }
   0x9   : > { %p394_p5 = por %p80_p2, %p79_p0  ;;  %p398_p6 = por %p86_p4, %p85_p3 }
   0xa   : > { %p228_p7 = scmp.ge.s32.totalorder %s337_s12, 1  ;;  %p113_p8 = scmp.lt.s32.totalorder %s337_s12, 3 }
   0xc   : > { %p114_p9 = pnand %p228_p7, %p113_p8 }
   0xd   : > { %s230_s23 = sshll.u32 (!%p114_p9), %s377_s13, 7  ;;  %s130_s24 = sand.u32 (!%p114_p9), 1, %s329_s10  }
   0xe   : > { %117 = sbr.rel (%p114_p9) target bundleno = 161 (0xa1), region = 28  ;;  %p133_p10 = scmp.lt.s32.totalorder (!%p114_p9), %s377_s13, 3 }
   0xf   : > { %s229_s25 = sshll.u32 (!%p114_p9), %s130_s24, 1  ;;  %s233_s30 = sshll.u32 (!%p114_p9), %s377_s13, 5 }
  0x10   : > { %s132_s3 = scalar_lea.vmem (!%p114_p9), [#allocation2], %s229_s25  ;;  %s418_s7 = scalar_lea.hbm (!%p114_p9), %s455_s2, %s233_s30 }
  0x11   : > { %s169_s4 = sshll.u32 (!%p114_p9), %s132_s3, 4  ;;  %s156_s8 = scalar_lea.sflag (!%p114_p9), [#allocation3], %s130_s24  ;;  %s170_s4 = int_to_ptr.vmem [resolvable:$true] %s169_s4 }
  0x12   : > { %s277_s14 = scalar_lea.vmem (!%p114_p9), %s170_s4, 32 }
  0x13   : > { %v136_v0 = vld [vmem:[%s453_s0] sm:$0x3]  ;;  %v339_v1 = vmov 0   ;;  %v138_v2 = vstv %s230_s23  ;;  %s134_s26 = scalar_select %p133_p10, %s377_s13, 3  ;;  %v140_v4 = vlaneseq }
  0x14   : > { %276 = vset.pattern.permute.xlu0 %v339_v1  ;;  %v139_v3 = vsub.s32 %v136_v0, %v138_v2  ;;  %p278_p11 = scmp.ne.s32.totalorder %s170_s4, %s277_s14  ;;  %s340_s13 = smov [#allocation2]  }
  0x15   : > { %s135_s29 = scalar_lea.vmem %s454_s1, %s134_s26  ;;  %v141_v5 = vand.u32 127, %v140_v4  ;;  %s281_s16 = sshll.u32 %s340_s13, 4  ;;  %s282_s16 = int_to_ptr.vmem [resolvable:$false] %s281_s16 }
  0x16   : > { %143 = vperm.xlu0 %276, %v139_v3   ;;  %v231_v6 = vld [vmem:[%s135_s29] ss:$0 sm:$0xff]  ;;  %p279_p12 = pnand %p278_p11, %p394_p5  ;;  %s283_s17 = scalar_lea.vmem %s282_s16, 64 }
  0x17   : > { %p284_p0 = scmp.lt.s32.totalorder %s170_s4, %s282_s16  ;;  %p285_p1 = scmp.lt.s32.totalorder %s283_s17, %s277_s14 }
  0x18   : > { %p280_p13 = pneg %p279_p12 }
  0x19   : > { %p286_p2 = por %p285_p1, %p284_p0 }
  0x1b   : > { %p287_p3 = pnand %p286_p2, %p280_p13 }
  0x91   : > { %v144_v7 = vpop.permute.xlu0 %143 }
  0x92   : > { %vm145_vm0 = vcmp.lt.s32.totalorder %v141_v5, %v144_v7 }
  0x93   : > { %v153_v8 = vsel %vm145_vm0, %v231_v6, 0.0 }
  0x94   : > { %154 = vst [vmem:[%s132_s3] sm:$0x3] %v153_v8 }
  0x95   : > { %290 = shalt.err (!%p287_p3)
}
  0x96   : > { %s291_s21 = scalar_lea.hbm %s418_s7, 32  ;;  %s295_s24 = scalar_lea.hbm %s455_s2, 64 }
  0x97   : > { %p292_p4 = scmp.ne.s32.totalorder %s418_s7, %s291_s21  ;;  %p296_p9 = scmp.lt.s32.totalorder %s418_s7, %s455_s2 }
  0x98   : > { %p297_p10 = scmp.lt.s32.totalorder %s295_s24, %s291_s21 }
  0x99   : > { %p293_p7 = pnand %p292_p4, %p394_p5 }
  0x9a   : > { %p298_p11 = por %p297_p10, %p296_p9 }
  0x9b   : > { %p294_p8 = pneg %p293_p7 }
  0x9d   : > { %p299_p12 = pnand %p298_p11, %p294_p8 }
  0x9f   : > { %302 = shalt.err (!%p299_p12)
}
  0xa0   : > { %236 = dma.vmem_to_hbm [thread:$0]  (%p394_p5), %s170_s4, 32, %s418_s7, %s156_s8  }
  0xa1 PF: > { %p242_p13 = scmp.ge.s32.totalorder %s337_s12, 2  ;;  %s181_s27 = sand.u32 1, %s325_s9  }
  0xa2   : > { %s182_s28 = scalar_lea.sflag [#allocation3], %s181_s27 }
  0xa3   : > { %p239_p0 = pnand %p242_p13, %p398_p6 }
  0xa5   : > { %p240_p1 = pneg %p239_p0 }
  0xa7   : > { %320 = dma.done.wait (%p240_p1), %s182_s28, 32  }
  0xa8   : > { %322 = vsyncadd (%p240_p1), %s182_s28, 4294967264  ;;  %p12_p2 = scmp.ge.s32.totalorder %s381_s15, 4   ;;  %s458_s9 = smov %s329_s10 }
  0xa9   : > { %s459_s10 = smov %s333_s11  ;;  %s460_s11 = smov %s392_s18 }
  0xaa   : > { %s461_s12 = smov %s381_s15  ;;  %14 = sbr.rel (!%p12_p2) target bundleno = 3 (0x3), region = 63 }
  0xaf   :  { %187 = vsyncpa [#allocation3], 1 }
  0xb0   :  { %189 = vsyncpa [#allocation3 + $0x1], 1 }

</bundles_post_ra>
